<compile_context>
chip_gen: v7x
topology: tpu7x:2x2x1
jax: 0.10.0
libtpu: 0.0.40
codegen_flags: <defaults>
</compile_context>

<pallas_src>
import functools

import jax
import jax.numpy as jnp
from jax.experimental import pallas as pl
from jax.experimental.pallas import tpu as pltpu


def _round_up(x, m):
    return ((x + m - 1) // m) * m


def _dueling_qnet_kernel(xT_ref, w1T_ref, b1_ref, wavT_ref, bav_ref, qT_ref,
                         *, out_size):
    # common_stream (transposed): h^T = relu(W1^T @ x^T + b1)   [hid, tb]
    # bf16 operands -> f32 accumulate; lane axis = batch (dense).
    h_t = jnp.dot(w1T_ref[...], xT_ref[...],
                  preferred_element_type=jnp.float32) + b1_ref[...]
    h_t = jnp.maximum(h_t, 0.0)

    # fused (advantage | value) stream, transposed: one matmul, rows padded to 8.
    av_t = jnp.dot(wavT_ref[...], h_t.astype(jnp.bfloat16),
                   preferred_element_type=jnp.float32) + bav_ref[...]

    adv_t = av_t[:out_size, :]                  # [out, tb]
    val_t = av_t[out_size:out_size + 1, :]      # [1,   tb]

    # dueling combination over the sublane axis (cheap XLU reduce), all f32.
    adv_mean = jnp.mean(adv_t, axis=0, keepdims=True)
    qT_ref[...] = (val_t + (adv_t - adv_mean)).astype(qT_ref.dtype)


def _pick_batch_tile(batch, block_batch):
    """Lane-axis batch tile: full batch when small, else a multiple of 128 that
    guarantees >=2 grid steps (so v7x's two TensorCores both get work)."""
    if batch <= 256:
        return batch                              # single block; == full dim is legal
    half = _round_up((batch + 1) // 2, 128)       # at least 2 grid steps
    return max(128, min(block_batch, half))


def prepare_params(params):
    """Hoisted weight prep (call ONCE, or after each optimizer step):
    fuse advantage|value into one head, transpose, pad rows to a multiple of 8,
    and cast matmul operands to bf16."""
    hid = params["w1"].shape[1]
    out_size = params["wa"].shape[1]
    pad_rows = _round_up(out_size + 1, 8)

    w1_t = params["w1"].T.astype(jnp.bfloat16)                       # [hid, in]
    b1 = params["b1"].reshape(hid, 1).astype(jnp.float32)            # [hid, 1]

    wav = jnp.concatenate([params["wa"], params["wv"]], axis=1)      # [hid, out+1]
    wav_t = jnp.zeros((pad_rows, hid), jnp.float32)
    wav_t = wav_t.at[:out_size + 1].set(wav.T).astype(jnp.bfloat16)  # [pad, hid]

    bav = jnp.concatenate([params["ba"], params["bv"]], axis=1).reshape(-1)
    bav_p = jnp.zeros((pad_rows, 1), jnp.float32).at[:out_size + 1, 0].set(bav)

    return {"w1_t": w1_t, "b1": b1, "wav_t": wav_t, "bav": bav_p}


def dueling_qnet_forward(x, prepared, *, out_size, block_batch=8192,
                         out_dtype=jnp.bfloat16):
    """x: [B, input_size] (any float dtype). prepared: output of prepare_params."""
    w1_t, b1 = prepared["w1_t"], prepared["b1"]
    wav_t, bav = prepared["wav_t"], prepared["bav"]

    batch, in_size = x.shape
    hid = w1_t.shape[0]

    # Layout plumbing: batch onto the lane axis (transpose fuses with the cast).
    x_t = x.T.astype(jnp.bfloat16)                # [in, batch]

    tb = _pick_batch_tile(batch, block_batch)
    grid = (pl.cdiv(batch, tb),)

    def resident(arr):
        return pl.BlockSpec(arr.shape, lambda i: (0, 0))

    flops = 2 * batch * (in_size * hid + hid * wav_t.shape[0])
    bytes_accessed = (
        x_t.size * 2                                  # x read (bf16)
        + batch * out_size * jnp.dtype(out_dtype).itemsize   # q write
        + w1_t.size * 2 + wav_t.size * 2 + b1.size * 4 + bav.size * 4
    )

    q_t = pl.pallas_call(
        functools.partial(_dueling_qnet_kernel, out_size=out_size),
        out_shape=jax.ShapeDtypeStruct((out_size, batch), out_dtype),
        grid=grid,
        in_specs=[
            pl.BlockSpec((in_size, tb), lambda i: (0, i)),   # x^T: tiled over batch lanes
            resident(w1_t), resident(b1),                    # weights stay VMEM-resident
            resident(wav_t), resident(bav),
        ],
        out_specs=pl.BlockSpec((out_size, tb), lambda i: (0, i)),  # q^T: lane-dense
        compiler_params=pltpu.CompilerParams(
            dimension_semantics=("parallel",)),
        cost_estimate=pl.CostEstimate(
            flops=flops, transcendentals=0, bytes_accessed=bytes_accessed),
    )(x_t, w1_t, b1, wav_t, bav)

    return q_t.T                                   # [batch, out_size]


def init_params(key, input_size, hidden_size, output_size):
    """Deterministic init mimicking nn.Linear's uniform(-1/sqrt(fan_in), +)."""
    ks = jax.random.split(key, 6)

    def lin(kw, kb, fan_in, fan_out):
        bound = 1.0 / jnp.sqrt(jnp.float32(fan_in))
        # stored pre-transposed: [fan_in, fan_out]
        w = jax.random.uniform(kw, (fan_in, fan_out), jnp.float32, -bound, bound)
        b = jax.random.uniform(kb, (1, fan_out), jnp.float32, -bound, bound)
        return w, b

    w1, b1 = lin(ks[0], ks[1], input_size, hidden_size)
    wa, ba = lin(ks[2], ks[3], hidden_size, output_size)
    wv, bv = lin(ks[4], ks[5], hidden_size, 1)
    return {"w1": w1, "b1": b1, "wa": wa, "ba": ba, "wv": wv, "bv": bv}


def reference_forward(x, p):
    """Pure-JAX reference with the same bf16-operand / f32-accumulate path."""
    out_size = p["wa"].shape[1]
    w1 = p["w1"].astype(jnp.bfloat16)
    wav = jnp.concatenate([p["wa"], p["wv"]], axis=1).astype(jnp.bfloat16)
    b1 = p["b1"].astype(jnp.float32)
    bav = jnp.concatenate([p["ba"], p["bv"]], axis=1).astype(jnp.float32)

    h = jnp.dot(x.astype(jnp.bfloat16), w1,
                preferred_element_type=jnp.float32) + b1
    h = jnp.maximum(h, 0.0)
    av = jnp.dot(h.astype(jnp.bfloat16), wav,
                 preferred_element_type=jnp.float32) + bav
    adv = av[:, :out_size]
    val = av[:, out_size:out_size + 1]
    return val + (adv - adv.mean(axis=-1, keepdims=True))


if __name__ == "__main__":
    input_size, hidden_size, output_size = 16, 32, 4
    batch = 8

    key = jax.random.PRNGKey(0)
    kx, kp = jax.random.split(key)
    x = jax.random.normal(kx, (batch, input_size), jnp.float32)
    params = init_params(kp, input_size, hidden_size, output_size)

    prepared = prepare_params(params)          # hoisted: fuse/cast/transpose once
    fwd = jax.jit(functools.partial(dueling_qnet_forward, out_size=output_size))

    q = jax.block_until_ready(fwd(x, prepared))

    q_ref = reference_forward(x, params)
    assert q.shape == (batch, output_size)
    assert jnp.allclose(q.astype(jnp.float32), q_ref, atol=2e-2, rtol=2e-2), \
        "mismatch vs reference"

    print("KERNEL_OK")
</pallas_src>

<mosaic_0001>
module attributes {stable_mosaic.version = 11 : i64} {
  func.func @_dueling_qnet_kernel(%arg0: i32, %arg1: memref<16x8xbf16, #tpu.memory_space<vmem>>, %arg2: memref<32x16xbf16, #tpu.memory_space<vmem>>, %arg3: memref<32x1xf32, #tpu.memory_space<vmem>>, %arg4: memref<8x32xbf16, #tpu.memory_space<vmem>>, %arg5: memref<8x1xf32, #tpu.memory_space<vmem>>, %arg6: memref<4x8xbf16, #tpu.memory_space<vmem>>) attributes {dimension_semantics = [#tpu.dimension_semantics<parallel>], iteration_bounds = array<i64: 1>, scalar_prefetch = 0 : i64, scratch_operands = 0 : i64, tpu.core_type = #tpu.core_type<tc>, window_params = [{transform_indices = @transform_0, window_bounds = array<i64: 16, 8>}, {pipeline_mode = #tpu.pipeline_mode<synchronous>, transform_indices = @transform_1, window_bounds = array<i64: 32, 16>}, {pipeline_mode = #tpu.pipeline_mode<synchronous>, transform_indices = @transform_2, window_bounds = array<i64: 32, 1>}, {pipeline_mode = #tpu.pipeline_mode<synchronous>, transform_indices = @transform_3, window_bounds = array<i64: 8, 32>}, {pipeline_mode = #tpu.pipeline_mode<synchronous>, transform_indices = @transform_4, window_bounds = array<i64: 8, 1>}, {transform_indices = @transform_5, window_bounds = array<i64: 4, 8>}]} {
    %c0 = arith.constant 0 : index
    %c0_0 = arith.constant 0 : index
    %0 = vector.load %arg2[%c0, %c0_0] : memref<32x16xbf16, #tpu.memory_space<vmem>>, vector<32x16xbf16>
    %c0_1 = arith.constant 0 : index
    %c0_2 = arith.constant 0 : index
    %1 = vector.load %arg1[%c0_1, %c0_2] : memref<16x8xbf16, #tpu.memory_space<vmem>>, vector<16x8xbf16>
    %cst = arith.constant dense<0.000000e+00> : vector<32x8xf32>
    %2 = tpu.matmul %0, %1, %cst {dimension_numbers = #tpu.dot_dimension_numbers<[1], [0], [0], [1], [0, 0, 1, 1], [], []>} : vector<32x16xbf16>, vector<16x8xbf16>, vector<32x8xf32> -> vector<32x8xf32>
    %c0_3 = arith.constant 0 : index
    %c0_4 = arith.constant 0 : index
    %3 = vector.load %arg3[%c0_3, %c0_4] : memref<32x1xf32, #tpu.memory_space<vmem>>, vector<32x1xf32>
    %4 = vector.broadcast %3 : vector<32x1xf32> to vector<32x8xf32>
    %5 = arith.addf %2, %4 : vector<32x8xf32>
    %cst_5 = arith.constant 0.000000e+00 : f32
    %6 = vector.broadcast %cst_5 : f32 to vector<32x8xf32>
    %7 = arith.maximumf %5, %6 : vector<32x8xf32>
    %c0_6 = arith.constant 0 : index
    %c0_7 = arith.constant 0 : index
    %8 = vector.load %arg4[%c0_6, %c0_7] : memref<8x32xbf16, #tpu.memory_space<vmem>>, vector<8x32xbf16>
    %9 = arith.truncf %7 : vector<32x8xf32> to vector<32x8xbf16>
    %cst_8 = arith.constant dense<0.000000e+00> : vector<8x8xf32>
    %10 = tpu.matmul %8, %9, %cst_8 {dimension_numbers = #tpu.dot_dimension_numbers<[1], [0], [0], [1], [0, 0, 1, 1], [], []>} : vector<8x32xbf16>, vector<32x8xbf16>, vector<8x8xf32> -> vector<8x8xf32>
    %c0_9 = arith.constant 0 : index
    %c0_10 = arith.constant 0 : index
    %11 = vector.load %arg5[%c0_9, %c0_10] : memref<8x1xf32, #tpu.memory_space<vmem>>, vector<8x1xf32>
    %12 = vector.broadcast %11 : vector<8x1xf32> to vector<8x8xf32>
    %13 = arith.addf %10, %12 : vector<8x8xf32>
    %14 = vector.extract_strided_slice %13 {offsets = [0, 0], sizes = [4, 8], strides = [1, 1]} : vector<8x8xf32> to vector<4x8xf32>
    %15 = vector.extract_strided_slice %13 {offsets = [4, 0], sizes = [1, 8], strides = [1, 1]} : vector<8x8xf32> to vector<1x8xf32>
    %cst_11 = arith.constant dense<0.000000e+00> : vector<8xf32>
    %16 = vector.multi_reduction <add>, %14, %cst_11 [0] : vector<4x8xf32> to vector<8xf32>
    %17 = vector.shape_cast %16 : vector<8xf32> to vector<1x8xf32>
    %cst_12 = arith.constant 4.000000e+00 : f32
    %18 = vector.broadcast %cst_12 : f32 to vector<1x8xf32>
    %19 = arith.divf %17, %18 : vector<1x8xf32>
    %20 = vector.broadcast %19 : vector<1x8xf32> to vector<4x8xf32>
    %21 = arith.subf %14, %20 : vector<4x8xf32>
    %22 = vector.broadcast %15 : vector<1x8xf32> to vector<4x8xf32>
    %23 = arith.addf %22, %21 : vector<4x8xf32>
    %24 = arith.truncf %23 : vector<4x8xf32> to vector<4x8xbf16>
    %c0_13 = arith.constant 0 : index
    %c0_14 = arith.constant 0 : index
    %25 = vector.load %arg6[%c0_13, %c0_14] : memref<4x8xbf16, #tpu.memory_space<vmem>>, vector<4x8xbf16>
    tpu.vector_store %arg6[%c0_13, %c0_14], %24 {strides = array<i32>} : memref<4x8xbf16, #tpu.memory_space<vmem>>, vector<4x8xbf16>,
    return
  }
  func.func @transform_0(%arg0: i32) -> (i32, i32) {
    %c0_i32 = arith.constant 0 : i32
    %c0_i32_0 = arith.constant 0 : i32
    return %c0_i32, %arg0 : i32, i32
  }
  func.func @transform_1(%arg0: i32) -> (i32, i32) {
    %c0_i32 = arith.constant 0 : i32
    %c0_i32_0 = arith.constant 0 : i32
    %c0_i32_1 = arith.constant 0 : i32
    return %c0_i32, %c0_i32_0 : i32, i32
  }
  func.func @transform_2(%arg0: i32) -> (i32, i32) {
    %c0_i32 = arith.constant 0 : i32
    %c0_i32_0 = arith.constant 0 : i32
    %c0_i32_1 = arith.constant 0 : i32
    return %c0_i32, %c0_i32_0 : i32, i32
  }
  func.func @transform_3(%arg0: i32) -> (i32, i32) {
    %c0_i32 = arith.constant 0 : i32
    %c0_i32_0 = arith.constant 0 : i32
    %c0_i32_1 = arith.constant 0 : i32
    return %c0_i32, %c0_i32_0 : i32, i32
  }
  func.func @transform_4(%arg0: i32) -> (i32, i32) {
    %c0_i32 = arith.constant 0 : i32
    %c0_i32_0 = arith.constant 0 : i32
    %c0_i32_1 = arith.constant 0 : i32
    return %c0_i32, %c0_i32_0 : i32, i32
  }
  func.func @transform_5(%arg0: i32) -> (i32, i32) {
    %c0_i32 = arith.constant 0 : i32
    %c0_i32_0 = arith.constant 0 : i32
    return %c0_i32, %arg0 : i32, i32
  }
}

</mosaic_0001>

<bundles_post_ra>
// kernel: dueling_qnet_forward.1
= control target key start
LH: loop header
LB: loop body
LE: loop exit
PB: predicated region body
PF: predicated region fallthrough
CT: control target
= control target key end

     0   :  { %vm68_vm0 = vcmask 130048   ;;  %v273_v3 = vmov 0   ;;  %s346_s0 = inlined_call_operand.vmem [shape: bf16[16,8], index: 0, kind: input, shape index: {}]   ;;  %s347_s1 = inlined_call_operand.vmem [shape: bf16[32,16], index: 1, kind: input, shape index: {}]   ;;  %s348_s2 = inlined_call_operand.vmem [shape: f32[32,1], index: 2, kind: input, shape index: {}]   ;;  %s349_s3 = inlined_call_operand.vmem [shape: bf16[8,32], index: 3, kind: input, shape index: {}]   ;;  %s350_s4 = inlined_call_operand.vmem [shape: f32[8,1], index: 4, kind: input, shape index: {}]   ;;  %s351_s5 = inlined_call_operand.hbm [shape: bf16[4,8], index: 5, kind: output, shape index: {}]  }
   0x1   :  { %v246_v0 = vld [vmem:[%s346_s0] sm:$0xff]   ;;  %v248_v2 = vld [vmem:[%s347_s1 + $0x8] sm:$0xff]   ;;  %244 = vset.pattern.permute.xlu0 %v273_v3  ;;  %v30_v5 = vld [vmem:[%s348_s2 + $0x10] sm:$0xff]  ;;  %245 = vset.pattern.permute.xlu1 %v273_v3 }
   0x2   :  { %v247_v1 = vld [vmem:[%s347_s1] sm:$0xff]   ;;  %226 = vmatprep.subr.bf16.mxu0 %v246_v0 }
   0x3   :  { %227 = vmatpush3.bf16.msra.mxu0 %v246_v0  ;;  %228 = vmatprep.mubr.msk.bf16.mxu0 %vm68_vm0, %v247_v1  ;;  %v28_v4 = vld [vmem:[%s348_s2] sm:$0xff] }
   0x4   :  { %34 = vperm.xlu0 %244, %v28_v4  }
   0x5   :  { %10 = vsyncpa [#allocation3], 0  ;;  %v29_v6 = vld [vmem:[%s348_s2 + $0x8] sm:$0xff]  ;;  %44 = vperm.xlu1 %245, %v30_v5   ;;  %v31_v7 = vld [vmem:[%s348_s2 + $0x18] sm:$0xff]  ;;  %v274_v9 = vmov 0.0   ;;  %vm275_vm1 = vmmov 0   ;;  %v192_v38 = vlaneseq }
   0x6   :  { %229 = vmatmul.mubr.msk.bf16.vlgmr.msra.gmra.mrb[0].mxu0 %vm68_vm0, %v248_v2  ;;  %v131_v8 = vld [vmem:[%s350_s4] sm:$0xff]  ;;  %232 = vmatprep.subr.bf16.mxu1 %v274_v9  ;;  %vm137_vm2 = vcmask 261120   ;;  %vm181_vm3 = vcmask 60416   ;;  %vm198_vm4 = vcmask 58368  }
   0x7   :  { %236 = vmatprep.mubr.msk.bf16.mxu1 %vm275_vm1, %v274_v9  ;;  %v128_v28 = vld [vmem:[%s349_s3] sm:$0xf]  ;;  %v193_v41 = vshrl.u32 %v192_v38, 7  ;;  %s276_s3 = smov [#allocation2]  }
   0x8   :  { %39 = vperm.xlu0 %244, %v29_v6   ;;  %s206_s7 = sshll.u32 %s276_s3, 4  ;;  %s207_s7 = int_to_ptr.vmem [resolvable:$true] %s206_s7 }
   0x9   :  { %49 = vperm.xlu1 %245, %v31_v7   ;;  %v194_v44 = vsub.s32 4, %v193_v41  ;;  %s249_s8 = scalar_lea.vmem %s207_s7, 32  ;;  %p254_p1 = scmp.lt.s32.totalorder %s207_s7, %s207_s7 }
   0xa   :  { %p250_p0 = scmp.ne.s32.totalorder %s207_s7, %s249_s8  ;;  %p255_p2 = scmp.lt.s32.totalorder %s249_s8, %s249_s8 }
   0xc   :  { %134 = vperm.xlu0 %244, %v131_v8   ;;  %p256_p3 = por %p255_p2, %p254_p1 }
   0xe   :  { %p257_p4 = pnand %p256_p3, %p250_p0 }
  0x83   :  { %v35_v11 = vpop.permute.xlu0 %34 }
  0x84   :  { %v45_v10 = vpop.permute.xlu1 %44 }
  0x87   :  { %v40_v18 = vpop.permute.xlu0 %39 }
  0x88   :  { %v50_v13 = vpop.permute.xlu1 %49 }
  0x8b   :  { %v135_v29 = vpop.permute.xlu0 %134 }
  0xd9   :  { %v230_v12 = vpop.f32.mrb[0].mxu0 }
  0xda   :  { %v118_v14 = vadd.f32 %v230_v12, %v45_v10  ;;  %v109_v15 = vpop.f32.mrb[1].mxu0 }
  0xdb   :  { %v110_v16 = vadd.f32 %v109_v15, %v35_v11  ;;  %v231_v17 = vpop.f32.mrb[2].mxu0 }
  0xdc   :  { %v121_v19 = vadd.f32 %v231_v17, %v50_v13  ;;  %v112_v20 = vpop.f32.mrb[3].mxu0  ;;  %v126_v22 = vmax.f32 %v118_v14, 0.0 }
  0xdd   :  { %v113_v21 = vadd.f32 %v112_v20, %v40_v18  ;;  %v124_v24 = vmax.f32 %v110_v16, 0.0 }
  0xde   :  { %v127_v23 = vmax.f32 %v121_v19, 0.0 }
  0xdf   :  { %v125_v25 = vmax.f32 %v113_v21, 0.0 }
  0xe0   :  { %v130_v26 = vpack.c.bf16 %v127_v23, %v126_v22 }
  0xe1   :  { %v129_v27 = vpack.c.bf16 %v125_v25, %v124_v24 }
  0xe3   :  { %233 = vmatpush3.bf16.msra.mxu1 %v129_v27 }
  0xe4   :  { %234 = vmatprep.subr.bf16.mxu1 %v274_v9 }
  0xe7   :  { %235 = vmatpush3.bf16.msra.mxu1 %v130_v26 }
  0xea   :  { %237 = vmatmul.mubr.msk.bf16.vlgmr.msra.gmra.mrb[0].mxu1 %vm137_vm2, %v128_v28 }
 0x1bd   :  { %v175_v30 = vpop.f32.mrb[0].mxu1 }
 0x1be   :  { %v176_v31 = vadd.f32 %v175_v30, %v135_v29  ;;  %v238_v32 = vpop.f32.mrb[1].mxu1 }
 0x1bf   :  { %v178_v33 = vpop.f32.mrb[2].mxu1 }
 0x1c0   :  { %v182_v34 = vsel %vm181_vm3, %v176_v31, 0.0  ;;  %v239_v35 = vpop.f32.mrb[3].mxu1  ;;  %v195_v47 = vrot.slane %v176_v31, %v194_v44 }
 0x1c1   :  { %v183_v36 = vrot.slane %v182_v34, 4 }
 0x1c3   :  { %v184_v37 = vadd.f32 %v183_v36, %v182_v34 }
 0x1c5   :  { %v185_v39 = vrot.slane %v184_v37, 2 }
 0x1c7   :  { %v186_v40 = vadd.f32 %v185_v39, %v184_v37 }
 0x1c9   :  { %v187_v42 = vrot.slane %v186_v40, 1 }
 0x1cb   :  { %v188_v43 = vadd.f32 %v187_v42, %v186_v40 }
 0x1cd   :  { %v190_v45 = vmul.f32 0.25, %v188_v43 }
 0x1cf   :  { %v191_v46 = vsub.f32 %v176_v31, %v190_v45 }
 0x1d1   :  { %v196_v48 = vadd.f32 %v195_v47, %v191_v46 }
 0x1d3   :  { %v197_v49 = vpack.c.bf16 %v196_v48, %v196_v48 }
 0x1d5   :  { %199 = vst.msk [vmem:[#allocation2] sm:$0x3] %vm198_vm4, %v197_v49 }
 0x1d6   :  { %260 = shalt.err (!%p257_p4)
}
 0x1d7   :  { %s261_s11 = scalar_lea.hbm %s351_s5, 32 }
 0x1d8   :  { %p262_p5 = scmp.ne.s32.totalorder %s351_s5, %s261_s11  ;;  %p265_p6 = scmp.lt.u32.totalorder %s261_s11, %s351_s5 }
 0x1da   :  { %p267_p7 = pnand %p265_p6, %p262_p5 }
 0x1dc   :  { %270 = shalt.err (!%p267_p7)
}
 0x1dd   :  { %209 = dma.vmem_to_hbm [thread:$0]  %s207_s7, 32, %s351_s5, [#allocation3]  }
 0x1de   :  { %271 = dma.done.wait [#allocation3], 32  }
 0x1df   :  { %272 = vsyncadd [#allocation3], 4294967264 }
 0x1e0   :  { %213 = vsyncpa [#allocation3], 1 }

</bundles_post_ra>
